<compile_context>
chip_gen: v7x
topology: tpu7x:2x2x1
jax: 0.10.0
libtpu: 0.0.40
codegen_flags: <defaults>
</compile_context>

<pallas_src>
import numpy as np
from functools import partial

import jax
import jax.numpy as jnp
from jax.experimental import pallas as pl
from jax.experimental.pallas import tpu as pltpu

_LANE = 128
_SUBLANE = 8
_MiB = 1024 * 1024
_MAX_LANE_TILE = 4096
_VMEM_CAP = None


def _cdiv(a, b):
    return -(-a // b)


# TODO(synk): the original get_real_clebsch_gordan (real spherical-harmonic CG conversion)
# is not shipped with the module; this is a deterministic stand-in with the same interface
# (list over mu of (m1_index, m2_index, multiplier) triples).
def get_real_clebsch_gordan(clebsch, l1, l2, lambd):
    result = [[] for _ in range(2 * lambd + 1)]
    for mu in range(2 * lambd + 1):
        M = mu - lambd
        for m1 in range(2 * l1 + 1):
            m2 = M - (m1 - l1) + l2
            if 0 <= m2 <= 2 * l2:
                result[mu].append((m1, m2, float(np.float32(clebsch[m1, m2]))))
    return result


# ---------------------------------------------------------------------------
# generation-aware VMEM budgeting / tile selection
# ---------------------------------------------------------------------------
def _vmem_capacity_bytes():
    global _VMEM_CAP
    if _VMEM_CAP is None:
        try:
            _VMEM_CAP = int(pltpu.get_tpu_info().vmem_capacity_bytes)
        except Exception:
            _VMEM_CAP = 64 * _MiB      # conservative fallback: v7x per-TensorCore VMEM
    return _VMEM_CAP


def _default_budget():
    # single-copy per-step block budget; Pallas double-buffers and intermediates add ~1 block
    return int(max(2 * _MiB, min(16 * _MiB, _vmem_capacity_bytes() // 8)))


def _vmem_limit(need_bytes):
    # need ~= double-buffered blocks + in-kernel intermediates; never above 3/4 of physical
    # VMEM (48 MiB on v7x, 96 MiB on v5e/v6e) so the compiler keeps internal headroom.
    cap = (3 * _vmem_capacity_bytes()) // 4
    return int(min(cap, max(32 * _MiB, need_bytes + 4 * _MiB)))


def _lane_tile(N, per_lane_bytes, budget_bytes):
    """Largest lane (N) tile -- a multiple of 128, or full N -- fitting the budget."""
    if N <= _LANE:
        return N
    lanes = max(_LANE, budget_bytes // max(per_lane_bytes, 1))
    tn = max(_LANE, min(_MAX_LANE_TILE, (lanes // _LANE) * _LANE))
    return N if tn >= N else tn


def _maybe_split_for_cores(tN, N, other_axis_blocks):
    """v7x has 2 TensorCores: avoid a single-block grid when N is large enough to split."""
    if other_axis_blocks == 1 and tN >= N and N >= 2 * _LANE:
        return min(N, _cdiv(_cdiv(N, 2), _LANE) * _LANE)
    return tN


# ---------------------------------------------------------------------------
# Pallas kernels
# ---------------------------------------------------------------------------
def _combine_outer_kernel(x1_ref, x2_ref, o_ref, *, per_mu, f2, flat_out):
    """out[mu, f1, f2, n] = sum_{(m1,m2,c) in per_mu[mu]} c * x1[m1,f1,n] * x2[m2,f2,n]."""
    x1 = x1_ref[...]                      # (M1, tF1, tN)
    x2 = x2_ref[...]                      # (M2, F2, tN)
    tf1, tn = x1.shape[1], x1.shape[2]
    for mu, pairs in enumerate(per_mu):   # static unroll: small mu / CG-pair extents
        acc = None
        for (m1, m2, c) in pairs:
            # fold the CG coefficient into the small (tF1, tN) operand, then broadcast-mul;
            # recomputed per pair (no cross-mu cache -> no VMEM spill traffic)
            row = x1[m1] if c == 1.0 else x1[m1] * c
            contrib = row[:, None, :] * x2[m2][None, :, :]      # (tF1, F2, tN)
            acc = contrib if acc is None else acc + contrib
        if acc is None:
            acc = jnp.zeros((tf1, f2, tn), jnp.float32)
        if flat_out:
            # F2 % 8 == 0 -> reshape is a layout no-op; sublane-dense (f1*F2 + f2) store
            o_ref[mu] = acc.reshape(tf1 * f2, tn).astype(o_ref.dtype)
        else:
            o_ref[mu] = acc.astype(o_ref.dtype)


def _combine_task_kernel(x1_ref, x2_ref, g1_ref, g2_ref, o_ref, *, per_mu):
    """out[mu, t, n] = sum_{(m1,m2,c)} c * (G1 @ x1[m1])[t,n] * (G2 @ x2[m2])[t,n]."""
    x1 = x1_ref[...]                      # (M1, F1, tN)
    x2 = x2_ref[...]                      # (M2, F2, tN)
    g1 = g1_ref[...]                      # (tT, F1) one-hot rows of task_first
    g2 = g2_ref[...]                      # (tT, F2) one-hot rows of task_second
    rows1, rows2 = {}, {}

    def r1(m):      # one-hot gather on the (otherwise idle) MXU; exact row selection
        if m not in rows1:
            rows1[m] = jnp.dot(g1, x1[m], preferred_element_type=jnp.float32,
                               precision=jax.lax.Precision.HIGHEST)
        return rows1[m]

    def r2(m):
        if m not in rows2:
            rows2[m] = jnp.dot(g2, x2[m], preferred_element_type=jnp.float32,
                               precision=jax.lax.Precision.HIGHEST)
        return rows2[m]

    for mu, pairs in enumerate(per_mu):
        acc = None
        for (m1, m2, c) in pairs:
            a = r1(m1) if c == 1.0 else r1(m1) * c
            contrib = a * r2(m2)
            acc = contrib if acc is None else acc + contrib
        if acc is None:
            acc = jnp.zeros(o_ref.shape[1:], jnp.float32)
        o_ref[mu] = acc.astype(o_ref.dtype)


# ---------------------------------------------------------------------------
# pallas_call wrappers (glue)
# ---------------------------------------------------------------------------
def _outer_combine_pallas(X1, X2, per_mu, *, budget_bytes, out_dtype):
    M1, F1, N = X1.shape
    M2, F2, _ = X2.shape
    n_mu = len(per_mu)
    osize = jnp.dtype(out_dtype).itemsize

    def per_lane_bytes(tf1):
        # one copy of each block + f32 intermediates (acc + one contribution temp)
        return (4 * (M1 * tf1 + M2 * F2) + osize * n_mu * tf1 * F2 + 4 * 2 * tf1 * F2)

    # F1 tile: full F1 if it fits together with at least a 128-lane tile, else a multiple of 8
    tF1 = F1
    while tF1 > _SUBLANE and per_lane_bytes(tF1) * _LANE > budget_bytes:
        tF1 = max(_SUBLANE, ((tF1 // 2) // _SUBLANE) * _SUBLANE)
    nF = _cdiv(F1, tF1)
    tN = _lane_tile(N, per_lane_bytes(tF1), budget_bytes)
    tN = _maybe_split_for_cores(tN, N, nF)
    nN = _cdiv(N, tN)

    need = (2 * (4 * (M1 * tF1 + M2 * F2) + osize * n_mu * tF1 * F2)
            + 4 * 2 * tF1 * F2) * tN

    # Sublane-dense flattened output when F2 % 8 == 0 (in-kernel reshape is a layout no-op).
    flat_out = (F2 % _SUBLANE == 0)
    if flat_out:
        out_shape = jax.ShapeDtypeStruct((n_mu, F1 * F2, N), out_dtype)
        out_spec = pl.BlockSpec((n_mu, tF1 * F2, tN), lambda n, f: (0, f, n))
    else:
        # TODO(synk): when F2 % 8 != 0 a fully dense flattened store would need a
        # sublane-crossing relayout in-kernel; keep F2 on sublanes and reshape outside (free).
        out_shape = jax.ShapeDtypeStruct((n_mu, F1, F2, N), out_dtype)
        out_spec = pl.BlockSpec((n_mu, tF1, F2, tN), lambda n, f: (0, f, 0, n))

    kernel = partial(_combine_outer_kernel, per_mu=per_mu, f2=F2, flat_out=flat_out)
    out = pl.pallas_call(
        kernel,
        out_shape=out_shape,
        grid_spec=pltpu.PrefetchScalarGridSpec(
            num_scalar_prefetch=0,
            grid=(nN, nF),           # F1 innermost: the X2 block is fetched once per N tile
            in_specs=[pl.BlockSpec((M1, tF1, tN), lambda n, f: (0, f, n)),
                      pl.BlockSpec((M2, F2, tN), lambda n, f: (0, 0, n))],
            out_specs=out_spec,
        ),
        compiler_params=pltpu.CompilerParams(
            dimension_semantics=("parallel", "parallel"),
            vmem_limit_bytes=_vmem_limit(need)),
    )(X1, X2)
    return out if flat_out else out.reshape(n_mu, F1 * F2, N)


def _task_combine_pallas(X1, X2, task_first, task_second, per_mu, *, budget_bytes, out_dtype):
    M1, F1, N = X1.shape
    M2, F2, _ = X2.shape
    n_mu = len(per_mu)
    T = len(task_first)
    osize = jnp.dtype(out_dtype).itemsize

    # static one-hot selection matrices: the gather becomes a matmul on the idle MXU
    G1 = np.zeros((T, F1), np.float32)
    G1[np.arange(T), np.asarray(task_first, dtype=np.int64)] = 1.0
    G2 = np.zeros((T, F2), np.float32)
    G2[np.arange(T), np.asarray(task_second, dtype=np.int64)] = 1.0

    def per_lane_bytes(tT):
        return (4 * (M1 * F1 + M2 * F2)            # x1 + x2 blocks
                + osize * n_mu * tT                # out block
                + 4 * (M1 + M2 + 2) * tT)          # gathered rows + acc + temp (f32)

    def gather_bytes(tT):
        return 4 * tT * (F1 + F2)                  # one-hot blocks (F on lanes)

    # task tile: full T if it fits with at least a 128-lane tile, else a multiple of 8
    tT = T
    while tT > _SUBLANE and (per_lane_bytes(tT) * _LANE + gather_bytes(tT)) > budget_bytes:
        tT = max(_SUBLANE, ((tT // 2) // _SUBLANE) * _SUBLANE)
    nT = _cdiv(T, tT)
    lane_budget = max(budget_bytes - gather_bytes(tT), per_lane_bytes(tT) * _LANE)
    tN = _lane_tile(N, per_lane_bytes(tT), lane_budget)
    tN = _maybe_split_for_cores(tN, N, nT)
    nN = _cdiv(N, tN)

    need = (2 * ((4 * (M1 * F1 + M2 * F2) + osize * n_mu * tT) * tN + gather_bytes(tT))
            + 4 * (M1 + M2 + 2) * tT * tN)

    kernel = partial(_combine_task_kernel, per_mu=per_mu)
    return pl.pallas_call(
        kernel,
        out_shape=jax.ShapeDtypeStruct((n_mu, T, N), out_dtype),
        grid_spec=pltpu.PrefetchScalarGridSpec(
            num_scalar_prefetch=0,
            grid=(nN, nT),           # T innermost: the X1/X2 blocks are fetched once per N tile
            in_specs=[pl.BlockSpec((M1, F1, tN), lambda n, t: (0, 0, n)),
                      pl.BlockSpec((M2, F2, tN), lambda n, t: (0, 0, n)),
                      pl.BlockSpec((tT, F1), lambda n, t: (t, 0)),
                      pl.BlockSpec((tT, F2), lambda n, t: (t, 0))],
            out_specs=pl.BlockSpec((n_mu, tT, tN), lambda n, t: (0, t, n)),
        ),
        compiler_params=pltpu.CompilerParams(
            dimension_semantics=("parallel", "parallel"),
            vmem_limit_bytes=_vmem_limit(need)),
    )(X1, X2, jnp.asarray(G1), jnp.asarray(G2))


# ---------------------------------------------------------------------------
# Module
# ---------------------------------------------------------------------------
class ClebschCombiningSinglePallas:
    def __init__(self, clebsch, lambd, task=None, *,
                 vmem_budget_bytes=None, out_dtype=jnp.float32):
        clebsch = np.asarray(clebsch, dtype=np.float32)
        self.clebsch = clebsch
        self.lambd = int(lambd)
        self.l1 = (clebsch.shape[0] - 1) // 2
        self.l2 = (clebsch.shape[1] - 1) // 2
        self.out_dtype = jnp.dtype(out_dtype)
        self.vmem_budget_bytes = int(vmem_budget_bytes) if vmem_budget_bytes else _default_budget()
        transformation = get_real_clebsch_gordan(clebsch, self.l1, self.l2, self.lambd)
        self.per_mu = tuple(
            tuple((int(m1), int(m2), float(c)) for (m1, m2, c) in transformation[mu])
            for mu in range(2 * self.lambd + 1))
        self.multiplier = float(transformation[0][0][2])
        if task is None:
            self.has_task = False
        else:
            if len(task[0]) == 0:
                raise ValueError("task shouldn't be empty")
            self.task_first = tuple(int(i) for i in task[0])
            self.task_second = tuple(int(i) for i in task[1])
            self.has_task = True

    def _effective_per_mu(self, n_m):
        if self.lambd == 0:
            # matches the PyTorch shortcut: single multiplier * sum over m of the product
            return (tuple((m, m, self.multiplier) for m in range(n_m)),)
        return self.per_mu

    def __call__(self, X1, X2):
        X1 = jnp.asarray(X1, jnp.float32)
        X2 = jnp.asarray(X2, jnp.float32)
        per_mu = self._effective_per_mu(X1.shape[0])
        if self.has_task:
            return _task_combine_pallas(X1, X2, self.task_first, self.task_second, per_mu,
                                        budget_bytes=self.vmem_budget_bytes,
                                        out_dtype=self.out_dtype)
        return _outer_combine_pallas(X1, X2, per_mu,
                                     budget_bytes=self.vmem_budget_bytes,
                                     out_dtype=self.out_dtype)


# ---------------------------------------------------------------------------
# NumPy reference (mirrors the PyTorch forward exactly)
# ---------------------------------------------------------------------------
def reference_forward(X1, X2, clebsch, lambd, task=None):
    clebsch = np.asarray(clebsch, dtype=np.float32)
    l1 = (clebsch.shape[0] - 1) // 2
    l2 = (clebsch.shape[1] - 1) // 2
    transformation = get_real_clebsch_gordan(clebsch, l1, l2, lambd)
    multiplier = np.float32(transformation[0][0][2])
    m1a, m2a, mults, mus = [], [], [], []
    for mu in range(2 * lambd + 1):
        for (m1, m2, c) in transformation[mu]:
            m1a.append(m1); m2a.append(m2); mults.append(c); mus.append(mu)
    mults = np.asarray(mults, dtype=np.float32)
    mus = np.asarray(mus, dtype=np.int64)

    def unrolled(A, B):
        if lambd == 0:
            return (np.sum(A * B, axis=0) * mults[0])[None, :, :]
        contributions = A[m1a] * B[m2a] * mults[:, None, None]
        result = np.zeros((2 * lambd + 1, B.shape[1], A.shape[2]), dtype=np.float32)
        np.add.at(result, mus, contributions)
        return result

    if task is None:
        if lambd == 0:
            first = np.transpose(X1, (2, 1, 0))          # (N, F1, M)
            second = np.transpose(X2, (2, 0, 1))         # (N, M, F2)
            res = np.matmul(first, second) * multiplier  # (N, F1, F2)
            return np.transpose(res.reshape(res.shape[0], -1, 1), (2, 1, 0))
        first = np.repeat(X1[:, :, None, :], X2.shape[1], axis=2)
        first = first.reshape(X1.shape[0], -1, X1.shape[2])
        second = np.repeat(X2[:, None, :, :], X1.shape[1], axis=1)
        second = second.reshape(X2.shape[0], -1, X2.shape[2])
        return unrolled(first, second)
    else:
        first = X1[:, np.asarray(task[0]), :]
        second = X2[:, np.asarray(task[1]), :]
        return unrolled(first, second)


# ---------------------------------------------------------------------------
if __name__ == "__main__":
    key = jax.random.PRNGKey(0)
    k1, k2, k3, k4, k5, k6, k7, k8 = jax.random.split(key, 8)

    l1, l2 = 1, 1
    F1, F2, N = 4, 5, 512
    clebsch = np.asarray(jax.random.normal(k1, (2 * l1 + 1, 2 * l2 + 1)), dtype=np.float32)
    X1 = jax.random.normal(k2, (2 * l1 + 1, F1, N), dtype=jnp.float32)
    X2 = jax.random.normal(k3, (2 * l2 + 1, F2, N), dtype=jnp.float32)

    # Case 1: lambd = 2, no task (outer-product combine; F2 % 8 != 0 -> 4-D block layout)
    mod2 = ClebschCombiningSinglePallas(clebsch, 2)
    out2 = jax.block_until_ready(mod2(X1, X2))
    ref2 = reference_forward(np.asarray(X1), np.asarray(X2), clebsch, 2)
    assert out2.shape == ref2.shape
    np.testing.assert_allclose(np.asarray(out2), ref2, rtol=1e-5, atol=1e-5)

    # Case 2: lambd = 0, no task (bmm path)
    mod0 = ClebschCombiningSinglePallas(clebsch, 0)
    out0 = jax.block_until_ready(mod0(X1, X2))
    ref0 = reference_forward(np.asarray(X1), np.asarray(X2), clebsch, 0)
    assert out0.shape == ref0.shape
    np.testing.assert_allclose(np.asarray(out0), ref0, rtol=1e-5, atol=1e-5)

    # Case 3: lambd = 1, with task (one-hot MXU gather fused into the kernel)
    Ft = 8
    task = ([0, 1, 2, 3, 4, 5, 6, 7, 0, 1, 2, 3, 4, 5, 6, 7],
            [0, 0, 1, 1, 2, 2, 3, 3, 4, 4, 5, 5, 6, 6, 7, 7])
    X1t = jax.random.normal(k4, (2 * l1 + 1, Ft, N), dtype=jnp.float32)
    X2t = jax.random.normal(k5, (2 * l2 + 1, Ft, N), dtype=jnp.float32)
    modt = ClebschCombiningSinglePallas(clebsch, 1, task=task)
    outt = jax.block_until_ready(modt(X1t, X2t))
    reft = reference_forward(np.asarray(X1t), np.asarray(X2t), clebsch, 1, task=task)
    assert outt.shape == reft.shape
    np.testing.assert_allclose(np.asarray(outt), reft, rtol=1e-5, atol=1e-5)

    # Case 4: larger l / features, F2 % 8 == 0 -> sublane-dense flattened output, with a
    # deliberately tiny VMEM budget to exercise the (F1-block, N-block) grid including
    # padded edge blocks (F1 % 8 != 0, N % 128 != 0).
    l1b, l2b = 2, 1
    F1b, F2b, Nb = 20, 16, 600
    clebsch_b = np.asarray(jax.random.normal(k6, (2 * l1b + 1, 2 * l2b + 1)), dtype=np.float32)
    X1b = jax.random.normal(k7, (2 * l1b + 1, F1b, Nb), dtype=jnp.float32)
    X2b = jax.random.normal(k8, (2 * l2b + 1, F2b, Nb), dtype=jnp.float32)
    modb = ClebschCombiningSinglePallas(clebsch_b, 2, vmem_budget_bytes=256 * 1024)
    outb = jax.block_until_ready(modb(X1b, X2b))
    refb = reference_forward(np.asarray(X1b), np.asarray(X2b), clebsch_b, 2)
    assert outb.shape == refb.shape
    np.testing.assert_allclose(np.asarray(outb), refb, rtol=1e-4, atol=1e-4)

    print("KERNEL_OK")
</pallas_src>

<mosaic_0001>
module attributes {stable_mosaic.version = 11 : i64} {
  func.func @_combine_outer_kernel(%arg0: i32, %arg1: i32, %arg2: memref<3x4x256xf32, #tpu.memory_space<vmem>>, %arg3: memref<3x5x256xf32, #tpu.memory_space<vmem>>, %arg4: memref<5x4x5x256xf32, #tpu.memory_space<vmem>>) attributes {dimension_semantics = [#tpu.dimension_semantics<parallel>, #tpu.dimension_semantics<parallel>], iteration_bounds = array<i64: 2, 1>, scalar_prefetch = 0 : i64, scratch_operands = 0 : i64, tpu.core_type = #tpu.core_type<tc>, window_params = [{transform_indices = @transform_0, window_bounds = array<i64: 3, 4, 256>}, {transform_indices = @transform_1, window_bounds = array<i64: 3, 5, 256>}, {transform_indices = @transform_2, window_bounds = array<i64: 5, 4, 5, 256>}]} {
    %c0 = arith.constant 0 : index
    %c0_0 = arith.constant 0 : index
    %c0_1 = arith.constant 0 : index
    %0 = vector.load %arg2[%c0, %c0_0, %c0_1] : memref<3x4x256xf32, #tpu.memory_space<vmem>>, vector<3x4x256xf32>
    %c0_2 = arith.constant 0 : index
    %c0_3 = arith.constant 0 : index
    %c0_4 = arith.constant 0 : index
    %1 = vector.load %arg3[%c0_2, %c0_3, %c0_4] : memref<3x5x256xf32, #tpu.memory_space<vmem>>, vector<3x5x256xf32>
    %2 = vector.extract_strided_slice %0 {offsets = [0, 0, 0], sizes = [1, 4, 256], strides = [1, 1, 1]} : vector<3x4x256xf32> to vector<1x4x256xf32>
    %3 = vector.shape_cast %2 : vector<1x4x256xf32> to vector<4x256xf32>
    %cst = arith.constant 1.00401425 : f32
    %4 = vector.broadcast %cst : f32 to vector<4x256xf32>
    %5 = arith.mulf %3, %4 : vector<4x256xf32>
    %6 = vector.shape_cast %5 : vector<4x256xf32> to vector<4x1x256xf32>
    %7 = vector.extract_strided_slice %1 {offsets = [0, 0, 0], sizes = [1, 5, 256], strides = [1, 1, 1]} : vector<3x5x256xf32> to vector<1x5x256xf32>
    %8 = vector.shape_cast %7 : vector<1x5x256xf32> to vector<5x256xf32>
    %9 = vector.shape_cast %8 : vector<5x256xf32> to vector<1x5x256xf32>
    %10 = vector.broadcast %6 : vector<4x1x256xf32> to vector<4x5x256xf32>
    %11 = vector.broadcast %9 : vector<1x5x256xf32> to vector<4x5x256xf32>
    %12 = arith.mulf %10, %11 : vector<4x5x256xf32>
    %c0_5 = arith.constant 0 : index
    %c0_6 = arith.constant 0 : index
    %c0_7 = arith.constant 0 : index
    %c0_8 = arith.constant 0 : index
    %13 = vector.load %arg4[%c0_5, %c0_6, %c0_7, %c0_8] : memref<5x4x5x256xf32, #tpu.memory_space<vmem>>, vector<1x4x5x256xf32>
    %14 = vector.shape_cast %13 : vector<1x4x5x256xf32> to vector<4x5x256xf32>
    %15 = vector.shape_cast %12 : vector<4x5x256xf32> to vector<1x4x5x256xf32>
    tpu.vector_store %arg4[%c0_5, %c0_6, %c0_7, %c0_8], %15 {strides = array<i32>} : memref<5x4x5x256xf32, #tpu.memory_space<vmem>>, vector<1x4x5x256xf32>,
    %16 = vector.extract_strided_slice %0 {offsets = [0, 0, 0], sizes = [1, 4, 256], strides = [1, 1, 1]} : vector<3x4x256xf32> to vector<1x4x256xf32>
    %17 = vector.shape_cast %16 : vector<1x4x256xf32> to vector<4x256xf32>
    %cst_9 = arith.constant -0.906337201 : f32
    %18 = vector.broadcast %cst_9 : f32 to vector<4x256xf32>
    %19 = arith.mulf %17, %18 : vector<4x256xf32>
    %20 = vector.shape_cast %19 : vector<4x256xf32> to vector<4x1x256xf32>
    %21 = vector.extract_strided_slice %1 {offsets = [1, 0, 0], sizes = [1, 5, 256], strides = [1, 1, 1]} : vector<3x5x256xf32> to vector<1x5x256xf32>
    %22 = vector.shape_cast %21 : vector<1x5x256xf32> to vector<5x256xf32>
    %23 = vector.shape_cast %22 : vector<5x256xf32> to vector<1x5x256xf32>
    %24 = vector.broadcast %20 : vector<4x1x256xf32> to vector<4x5x256xf32>
    %25 = vector.broadcast %23 : vector<1x5x256xf32> to vector<4x5x256xf32>
    %26 = arith.mulf %24, %25 : vector<4x5x256xf32>
    %27 = vector.extract_strided_slice %0 {offsets = [1, 0, 0], sizes = [1, 4, 256], strides = [1, 1, 1]} : vector<3x4x256xf32> to vector<1x4x256xf32>
    %28 = vector.shape_cast %27 : vector<1x4x256xf32> to vector<4x256xf32>
    %cst_10 = arith.constant -1.17136693 : f32
    %29 = vector.broadcast %cst_10 : f32 to vector<4x256xf32>
    %30 = arith.mulf %28, %29 : vector<4x256xf32>
    %31 = vector.shape_cast %30 : vector<4x256xf32> to vector<4x1x256xf32>
    %32 = vector.extract_strided_slice %1 {offsets = [0, 0, 0], sizes = [1, 5, 256], strides = [1, 1, 1]} : vector<3x5x256xf32> to vector<1x5x256xf32>
    %33 = vector.shape_cast %32 : vector<1x5x256xf32> to vector<5x256xf32>
    %34 = vector.shape_cast %33 : vector<5x256xf32> to vector<1x5x256xf32>
    %35 = vector.broadcast %31 : vector<4x1x256xf32> to vector<4x5x256xf32>
    %36 = vector.broadcast %34 : vector<1x5x256xf32> to vector<4x5x256xf32>
    %37 = arith.mulf %35, %36 : vector<4x5x256xf32>
    %38 = arith.addf %26, %37 : vector<4x5x256xf32>
    %c1 = arith.constant 1 : index
    %c0_11 = arith.constant 0 : index
    %c0_12 = arith.constant 0 : index
    %c0_13 = arith.constant 0 : index
    %39 = vector.load %arg4[%c1, %c0_11, %c0_12, %c0_13] : memref<5x4x5x256xf32, #tpu.memory_space<vmem>>, vector<1x4x5x256xf32>
    %40 = vector.shape_cast %39 : vector<1x4x5x256xf32> to vector<4x5x256xf32>
    %41 = vector.shape_cast %38 : vector<4x5x256xf32> to vector<1x4x5x256xf32>
    tpu.vector_store %arg4[%c1, %c0_11, %c0_12, %c0_13], %41 {strides = array<i32>} : memref<5x4x5x256xf32, #tpu.memory_space<vmem>>, vector<1x4x5x256xf32>,
    %42 = vector.extract_strided_slice %0 {offsets = [0, 0, 0], sizes = [1, 4, 256], strides = [1, 1, 1]} : vector<3x4x256xf32> to vector<1x4x256xf32>
    %43 = vector.shape_cast %42 : vector<1x4x256xf32> to vector<4x256xf32>
    %cst_14 = arith.constant -0.748172223 : f32
    %44 = vector.broadcast %cst_14 : f32 to vector<4x256xf32>
    %45 = arith.mulf %43, %44 : vector<4x256xf32>
    %46 = vector.shape_cast %45 : vector<4x256xf32> to vector<4x1x256xf32>
    %47 = vector.extract_strided_slice %1 {offsets = [2, 0, 0], sizes = [1, 5, 256], strides = [1, 1, 1]} : vector<3x5x256xf32> to vector<1x5x256xf32>
    %48 = vector.shape_cast %47 : vector<1x5x256xf32> to vector<5x256xf32>
    %49 = vector.shape_cast %48 : vector<5x256xf32> to vector<1x5x256xf32>
    %50 = vector.broadcast %46 : vector<4x1x256xf32> to vector<4x5x256xf32>
    %51 = vector.broadcast %49 : vector<1x5x256xf32> to vector<4x5x256xf32>
    %52 = arith.mulf %50, %51 : vector<4x5x256xf32>
    %53 = vector.extract_strided_slice %0 {offsets = [1, 0, 0], sizes = [1, 4, 256], strides = [1, 1, 1]} : vector<3x4x256xf32> to vector<1x4x256xf32>
    %54 = vector.shape_cast %53 : vector<1x4x256xf32> to vector<4x256xf32>
    %cst_15 = arith.constant -0.871232807 : f32
    %55 = vector.broadcast %cst_15 : f32 to vector<4x256xf32>
    %56 = arith.mulf %54, %55 : vector<4x256xf32>
    %57 = vector.shape_cast %56 : vector<4x256xf32> to vector<4x1x256xf32>
    %58 = vector.extract_strided_slice %1 {offsets = [1, 0, 0], sizes = [1, 5, 256], strides = [1, 1, 1]} : vector<3x5x256xf32> to vector<1x5x256xf32>
    %59 = vector.shape_cast %58 : vector<1x5x256xf32> to vector<5x256xf32>
    %60 = vector.shape_cast %59 : vector<5x256xf32> to vector<1x5x256xf32>
    %61 = vector.broadcast %57 : vector<4x1x256xf32> to vector<4x5x256xf32>
    %62 = vector.broadcast %60 : vector<1x5x256xf32> to vector<4x5x256xf32>
    %63 = arith.mulf %61, %62 : vector<4x5x256xf32>
    %64 = arith.addf %52, %63 : vector<4x5x256xf32>
    %65 = vector.extract_strided_slice %0 {offsets = [2, 0, 0], sizes = [1, 4, 256], strides = [1, 1, 1]} : vector<3x4x256xf32> to vector<1x4x256xf32>
    %66 = vector.shape_cast %65 : vector<1x4x256xf32> to vector<4x256xf32>
    %cst_16 = arith.constant 0.723929941 : f32
    %67 = vector.broadcast %cst_16 : f32 to vector<4x256xf32>
    %68 = arith.mulf %66, %67 : vector<4x256xf32>
    %69 = vector.shape_cast %68 : vector<4x256xf32> to vector<4x1x256xf32>
    %70 = vector.extract_strided_slice %1 {offsets = [0, 0, 0], sizes = [1, 5, 256], strides = [1, 1, 1]} : vector<3x5x256xf32> to vector<1x5x256xf32>
    %71 = vector.shape_cast %70 : vector<1x5x256xf32> to vector<5x256xf32>
    %72 = vector.shape_cast %71 : vector<5x256xf32> to vector<1x5x256xf32>
    %73 = vector.broadcast %69 : vector<4x1x256xf32> to vector<4x5x256xf32>
    %74 = vector.broadcast %72 : vector<1x5x256xf32> to vector<4x5x256xf32>
    %75 = arith.mulf %73, %74 : vector<4x5x256xf32>
    %76 = arith.addf %64, %75 : vector<4x5x256xf32>
    %c2 = arith.constant 2 : index
    %c0_17 = arith.constant 0 : index
    %c0_18 = arith.constant 0 : index
    %c0_19 = arith.constant 0 : index
    %77 = vector.load %arg4[%c2, %c0_17, %c0_18, %c0_19] : memref<5x4x5x256xf32, #tpu.memory_space<vmem>>, vector<1x4x5x256xf32>
    %78 = vector.shape_cast %77 : vector<1x4x5x256xf32> to vector<4x5x256xf32>
    %79 = vector.shape_cast %76 : vector<4x5x256xf32> to vector<1x4x5x256xf32>
    tpu.vector_store %arg4[%c2, %c0_17, %c0_18, %c0_19], %79 {strides = array<i32>} : memref<5x4x5x256xf32, #tpu.memory_space<vmem>>, vector<1x4x5x256xf32>,
    %80 = vector.extract_strided_slice %0 {offsets = [1, 0, 0], sizes = [1, 4, 256], strides = [1, 1, 1]} : vector<3x4x256xf32> to vector<1x4x256xf32>
    %81 = vector.shape_cast %80 : vector<1x4x256xf32> to vector<4x256xf32>
    %cst_20 = arith.constant 0.5888381 : f32
    %82 = vector.broadcast %cst_20 : f32 to vector<4x256xf32>
    %83 = arith.mulf %81, %82 : vector<4x256xf32>
    %84 = vector.shape_cast %83 : vector<4x256xf32> to vector<4x1x256xf32>
    %85 = vector.extract_strided_slice %1 {offsets = [2, 0, 0], sizes = [1, 5, 256], strides = [1, 1, 1]} : vector<3x5x256xf32> to vector<1x5x256xf32>
    %86 = vector.shape_cast %85 : vector<1x5x256xf32> to vector<5x256xf32>
    %87 = vector.shape_cast %86 : vector<5x256xf32> to vector<1x5x256xf32>
    %88 = vector.broadcast %84 : vector<4x1x256xf32> to vector<4x5x256xf32>
    %89 = vector.broadcast %87 : vector<1x5x256xf32> to vector<4x5x256xf32>
    %90 = arith.mulf %88, %89 : vector<4x5x256xf32>
    %91 = vector.extract_strided_slice %0 {offsets = [2, 0, 0], sizes = [1, 4, 256], strides = [1, 1, 1]} : vector<3x4x256xf32> to vector<1x4x256xf32>
    %92 = vector.shape_cast %91 : vector<1x4x256xf32> to vector<4x256xf32>
    %cst_21 = arith.constant -1.02559817 : f32
    %93 = vector.broadcast %cst_21 : f32 to vector<4x256xf32>
    %94 = arith.mulf %92, %93 : vector<4x256xf32>
    %95 = vector.shape_cast %94 : vector<4x256xf32> to vector<4x1x256xf32>
    %96 = vector.extract_strided_slice %1 {offsets = [1, 0, 0], sizes = [1, 5, 256], strides = [1, 1, 1]} : vector<3x5x256xf32> to vector<1x5x256xf32>
    %97 = vector.shape_cast %96 : vector<1x5x256xf32> to vector<5x256xf32>
    %98 = vector.shape_cast %97 : vector<5x256xf32> to vector<1x5x256xf32>
    %99 = vector.broadcast %95 : vector<4x1x256xf32> to vector<4x5x256xf32>
    %100 = vector.broadcast %98 : vector<1x5x256xf32> to vector<4x5x256xf32>
    %101 = arith.mulf %99, %100 : vector<4x5x256xf32>
    %102 = arith.addf %90, %101 : vector<4x5x256xf32>
    %c3 = arith.constant 3 : index
    %c0_22 = arith.constant 0 : index
    %c0_23 = arith.constant 0 : index
    %c0_24 = arith.constant 0 : index
    %103 = vector.load %arg4[%c3, %c0_22, %c0_23, %c0_24] : memref<5x4x5x256xf32, #tpu.memory_space<vmem>>, vector<1x4x5x256xf32>
    %104 = vector.shape_cast %103 : vector<1x4x5x256xf32> to vector<4x5x256xf32>
    %105 = vector.shape_cast %102 : vector<4x5x256xf32> to vector<1x4x5x256xf32>
    tpu.vector_store %arg4[%c3, %c0_22, %c0_23, %c0_24], %105 {strides = array<i32>} : memref<5x4x5x256xf32, #tpu.memory_space<vmem>>, vector<1x4x5x256xf32>,
    %106 = vector.extract_strided_slice %0 {offsets = [2, 0, 0], sizes = [1, 4, 256], strides = [1, 1, 1]} : vector<3x4x256xf32> to vector<1x4x256xf32>
    %107 = vector.shape_cast %106 : vector<1x4x256xf32> to vector<4x256xf32>
    %cst_25 = arith.constant 1.66162801 : f32
    %108 = vector.broadcast %cst_25 : f32 to vector<4x256xf32>
    %109 = arith.mulf %107, %108 : vector<4x256xf32>
    %110 = vector.shape_cast %109 : vector<4x256xf32> to vector<4x1x256xf32>
    %111 = vector.extract_strided_slice %1 {offsets = [2, 0, 0], sizes = [1, 5, 256], strides = [1, 1, 1]} : vector<3x5x256xf32> to vector<1x5x256xf32>
    %112 = vector.shape_cast %111 : vector<1x5x256xf32> to vector<5x256xf32>
    %113 = vector.shape_cast %112 : vector<5x256xf32> to vector<1x5x256xf32>
    %114 = vector.broadcast %110 : vector<4x1x256xf32> to vector<4x5x256xf32>
    %115 = vector.broadcast %113 : vector<1x5x256xf32> to vector<4x5x256xf32>
    %116 = arith.mulf %114, %115 : vector<4x5x256xf32>
    %c4 = arith.constant 4 : index
    %c0_26 = arith.constant 0 : index
    %c0_27 = arith.constant 0 : index
    %c0_28 = arith.constant 0 : index
    %117 = vector.load %arg4[%c4, %c0_26, %c0_27, %c0_28] : memref<5x4x5x256xf32, #tpu.memory_space<vmem>>, vector<1x4x5x256xf32>
    %118 = vector.shape_cast %117 : vector<1x4x5x256xf32> to vector<4x5x256xf32>
    %119 = vector.shape_cast %116 : vector<4x5x256xf32> to vector<1x4x5x256xf32>
    tpu.vector_store %arg4[%c4, %c0_26, %c0_27, %c0_28], %119 {strides = array<i32>} : memref<5x4x5x256xf32, #tpu.memory_space<vmem>>, vector<1x4x5x256xf32>,
    return
  }
  func.func @transform_0(%arg0: i32, %arg1: i32) -> (i32, i32, i32) {
    %c0_i32 = arith.constant 0 : i32
    %c0_i32_0 = arith.constant 0 : i32
    return %c0_i32, %arg1, %arg0 : i32, i32, i32
  }
  func.func @transform_1(%arg0: i32, %arg1: i32) -> (i32, i32, i32) {
    %c0_i32 = arith.constant 0 : i32
    %c0_i32_0 = arith.constant 0 : i32
    %c0_i32_1 = arith.constant 0 : i32
    return %c0_i32, %c0_i32_0, %arg0 : i32, i32, i32
  }
  func.func @transform_2(%arg0: i32, %arg1: i32) -> (i32, i32, i32, i32) {
    %c0_i32 = arith.constant 0 : i32
    %c0_i32_0 = arith.constant 0 : i32
    %c0_i32_1 = arith.constant 0 : i32
    return %c0_i32, %arg1, %c0_i32_0, %arg0 : i32, i32, i32, i32
  }
}

</mosaic_0001>

<bundles_post_ra>
// kernel: tpu_custom_call.1
= control target key start
LH: loop header
LB: loop body
LE: loop exit
PB: predicated region body
PF: predicated region fallthrough
CT: control target
= control target key end

     0   :  { %s1351_s9 = smov 0   ;;  %s1353_s10 = smov 0   ;;  %s1802_s0 = inlined_call_operand.vmem [shape: f32[3,4,512], index: 0, kind: input, shape index: {}]   ;;  %s1803_s1 = inlined_call_operand.vmem [shape: f32[3,5,512], index: 1, kind: input, shape index: {}]   ;;  %s1804_s2 = inlined_call_operand.vmem [shape: f32[5,4,5,512], index: 2, kind: output, shape index: {}]  }
   0x1   :  { %s1355_s11 = smov 0   ;;  %s1357_s12 = smov 0  }
   0x2   :  { %s1359_s13 = smov 0  }
   0x3 LB: > { %s24_s14 = sadd.s32 1, %s1329_s12  ;;  %s1201_s15 = sadd.s32 4294967295, %s1333_s13   ;;  %s1333_s13 = sphi %s1359_s13, %s12_s13   ;;  %s1329_s12 = sphi %s1357_s12, %s1810_s12   ;;  %s1325_s11 = sphi %s1355_s11, %s1809_s11   ;;  %s1321_s10 = sphi %s1353_s10, %s1808_s10   ;;  %s1317_s9 = sphi %s1351_s9, %s1807_s9  }
   0x4   : > { %p26_p0 = scmp.ge.s32.totalorder %s24_s14, 2  ;;  %p40_p1 = scmp.ne.s32.totalorder %s1321_s10, %s1317_s9 }
   0x5   : > { %p41_p2 = scmp.eq.s32.totalorder %s1333_s13, 0  ;;  %p98_p4 = scmp.eq.s32.totalorder %s1201_s15, 1 }
   0x6   : > { %s1812_s14 = smov (%p26_p0, %s24_s14), 0  ;;  %s33_s18 = sadd.s32 1, %s1321_s10 }
   0x7   : > { %p1383_p3 = por %p41_p2, %p40_p1  ;;  %s29_s17 = ssub.s32 %s1329_s12, %s1812_s14 }
   0x8   : > { %p31_p5 = scmp.eq.s32.totalorder %s29_s17, 0  ;;  %p1390_p6 = por %p98_p4, %p40_p1 }
   0x9   : > { %p1204_p7 = scmp.ge.s32.totalorder %s1333_s13, 2 }
   0xa   : > { %s1395_s20 = scalar_select %p31_p5, %s1321_s10, %s33_s18  }
   0xb   : > { %120 = sbr.rel (%p1204_p7) target bundleno = 32 (0x20), region = 16 }
  0x12   : > { %123 = sbr.rel (!%p1383_p3) target bundleno = 25 (0x19), region = 20  ;;  %s125_s21 = sand.u32 (%p1383_p3), 1, %s1321_s10  }
  0x13   : > { %s1246_s22 = sshll.u32 (%p1383_p3), %s1329_s12, 3  ;;  %s1249_s23 = smul.u32 (%p1383_p3), 24, %s125_s21 }
  0x14   : > { %s132_s26 = scalar_lea.vmem (%p1383_p3), %s1802_s0, %s1246_s22 }
  0x15   : > { %v164_v0 = vld [vmem:[%s132_s26] sm:$0xff] (%p1383_p3)  ;;  %v166_v1 = vld [vmem:[%s132_s26 + $0x10] sm:$0xff] (%p1383_p3)  ;;  %s127_s27 = scalar_lea.vmem (%p1383_p3), [#allocation2], %s1249_s23 }
  0x16   : > { %v168_v2 = vld [vmem:[%s132_s26 + $0x20] sm:$0xff] (%p1383_p3)  ;;  %165 = vst [vmem:[%s127_s27] sm:$0xff] (%p1383_p3), %v164_v0  ;;  %167 = vst [vmem:[%s127_s27 + $0x8] sm:$0xff] (%p1383_p3), %v166_v1 }
  0x17   : > { %169 = vst [vmem:[%s127_s27 + $0x10] sm:$0xff] (%p1383_p3), %v168_v2 }
  0x19 PF: > { %175 = sbr.rel (!%p1383_p3) target bundleno = 32 (0x20), region = 58  ;;  %s177_s28 = sand.u32 (%p1383_p3), 1, %s1321_s10  }
  0x1a   : > { %s1247_s29 = sshll.u32 (%p1383_p3), %s1329_s12, 4  ;;  %s1250_s30 = smul.u32 (%p1383_p3), 48, %s177_s28 }
  0x1b   : > { %s182_s5 = scalar_lea.vmem (%p1383_p3), %s1803_s1, %s1247_s29 }
  0x1c   : > { %v195_v3 = vld [vmem:[%s182_s5] sm:$0xff] (%p1383_p3)  ;;  %v197_v4 = vld [vmem:[%s182_s5 + $0x8] sm:$0xff] (%p1383_p3)  ;;  %s179_s6 = scalar_lea.vmem (%p1383_p3), [#allocation3], %s1250_s30 }
  0x1d   : > { %v199_v5 = vld [vmem:[%s182_s5 + $0x20] sm:$0xff] (%p1383_p3)  ;;  %v201_v6 = vld [vmem:[%s182_s5 + $0x28] sm:$0xff] (%p1383_p3)  ;;  %196 = vst [vmem:[%s179_s6] sm:$0xff] (%p1383_p3), %v195_v3  ;;  %198 = vst [vmem:[%s179_s6 + $0x8] sm:$0xff] (%p1383_p3), %v197_v4 }
  0x1e   : > { %v203_v7 = vld [vmem:[%s182_s5 + $0x40] sm:$0xff] (%p1383_p3)  ;;  %v205_v8 = vld [vmem:[%s182_s5 + $0x48] sm:$0xff] (%p1383_p3)  ;;  %200 = vst [vmem:[%s179_s6 + $0x10] sm:$0xff] (%p1383_p3), %v199_v5  ;;  %202 = vst [vmem:[%s179_s6 + $0x18] sm:$0xff] (%p1383_p3), %v201_v6 }
  0x1f   : > { %204 = vst [vmem:[%s179_s6 + $0x20] sm:$0xff] (%p1383_p3), %v203_v7  ;;  %206 = vst [vmem:[%s179_s6 + $0x28] sm:$0xff] (%p1383_p3), %v205_v8 }
  0x20 PF: > { %p1209_p8 = scmp.ge.s32.totalorder %s1333_s13, 1  ;;  %p211_p9 = scmp.lt.s32.totalorder %s1333_s13, 3 }
  0x22   : > { %p212_p10 = pnand %p1209_p8, %p211_p9 }
  0x23   : > { %s1415_s7 = sand.u32 (!%p212_p10), 1, %s1317_s9   ;;  %v267_v9 = vlaneseq (!%p212_p10)  ;;  %v1335_v10 = vmov (!%p212_p10), 1966171168  }
  0x24   : > { %215 = sbr.rel (%p212_p10) target bundleno = 123 (0x7b), region = 81  ;;  %v265_v11 = vunpack.c.l.s4 (!%p212_p10), %v1335_v10 }
  0x25   : > { %s1251_s8 = smul.u32 (!%p212_p10), 24, %s1415_s7  ;;  %v268_v12 = vshrl.u32 (!%p212_p10), %v267_v9, 7 }
  0x26   : > { %v266_v13 = vunpack.c.0.s8 (!%p212_p10), %v265_v11  ;;  %s1252_s16 = smul.u32 (!%p212_p10), 48, %s1415_s7 }
  0x27   : > { %s220_s15 = scalar_lea.vmem (!%p212_p10), [#allocation2], %s1251_s8  ;;  %v1423_v19 = vsub.s32 (!%p212_p10), 0, %v268_v12  ;;  %v1425_v20 = vsub.s32 (!%p212_p10), 1, %v268_v12  ;;  %s1253_s9 = smul.u32 (!%p212_p10), 320, %s1415_s7 }
  0x28   : > { %v253_v14 = vld [vmem:[%s220_s15] sm:$0xff] (!%p212_p10)  ;;  %v254_v15 = vld [vmem:[%s220_s15 + $0x8] sm:$0xff] (!%p212_p10)  ;;  %v1419_v16 = vsub.s32 (!%p212_p10), %v266_v13, %v268_v12  ;;  %v1421_v17 = vld [vmem:[%s220_s15 + $0x10] sm:$0xff] (!%p212_p10)  ;;  %s1461_s17 = scalar_lea.vmem (!%p212_p10), [#allocation3], %s1252_s16 }
  0x29   : > { %v262_v18 = vmul.f32 (!%p212_p10), 1.0040143, %v253_v14  ;;  %v344_v21 = vmul.f32 (!%p212_p10), -0.9063372, %v253_v14  ;;  %v418_v22 = vmul.f32 (!%p212_p10), -1.1713669, %v254_v15 }
  0x2a   : > { %v509_v23 = vmul.f32 (!%p212_p10), -0.7481722, %v253_v14  ;;  %v583_v24 = vmul.f32 (!%p212_p10), -0.8712328, %v254_v15  ;;  %v1430_v27 = vmul.f32 (!%p212_p10), 0.72392994, %v1421_v17 }
  0x2b   : > { %v270_v25 = vrot.slane %v262_v18, %v1419_v16  ;;  %v352_v26 = vrot.slane %v344_v21, %v1419_v16  ;;  %v1432_v28 = vmul.f32 0.5888381, %v254_v15  ;;  %v426_v29 = vrot.slane %v418_v22, %v1419_v16  ;;  %v1464_v45 = vld [vmem:[%s1461_s17] sm:$0x1f]  ;;  %v1467_v46 = vld [vmem:[%s1461_s17 + $0x8] sm:$0x1f] }
  0x2c   : > { %v1437_v30 = vrot.slane %v509_v23, %v1419_v16  ;;  %v1440_v31 = vrot.slane %v583_v24, %v1419_v16  ;;  %v1443_v32 = vmul.f32 -1.0255982, %v1421_v17  ;;  %v1474_v51 = vld [vmem:[%s1461_s17 + $0x10] sm:$0x1f]  ;;  %v1481_v56 = vld [vmem:[%s1461_s17 + $0x18] sm:$0x1f] }
  0x2d   : > { %v278_v33 = vrot.slane %v270_v25, %v1419_v16  ;;  %v271_v34 = vcombine.high %v270_v25, %v270_v25  ;;  %v360_v35 = vrot.slane %v352_v26, %v1419_v16  ;;  %v353_v36 = vcombine.high %v352_v26, %v352_v26  ;;  %s1488_s18 = scalar_lea.vmem [#allocation4], %s1253_s9  ;;  %s1248_s21 = sshll.u32 (%p1390_p6), %s1325_s11, 4 }
  0x2e   : > { %v434_v37 = vrot.slane %v426_v29, %v1419_v16  ;;  %v427_v38 = vcombine.high %v426_v29, %v426_v29  ;;  %v1450_v39 = vrot.slane %v1437_v30, %v1419_v16  ;;  %v1454_v40 = vrot.slane %v1440_v31, %v1419_v16  ;;  %s1708_s24 = scalar_lea.vmem (%p1390_p6), %s1804_s2, %s1248_s21 }
  0x2f   : > { %v291_v41 = vrot.slane %v278_v33, %v1423_v19  ;;  %v295_v42 = vrot.slane %v278_v33, %v1425_v20  ;;  %v285_v43 = vrot.slane %v271_v34, %v1419_v16  ;;  %v286_v44 = vcombine.high %v278_v33, %v278_v33 }
  0x30   : > { %v373_v47 = vrot.slane %v360_v35, %v1423_v19  ;;  %v447_v48 = vrot.slane %v434_v37, %v1423_v19  ;;  %v377_v49 = vrot.slane %v360_v35, %v1425_v20  ;;  %v451_v50 = vrot.slane %v434_v37, %v1425_v20 }
  0x31   : > { %v328_v52 = vmul.f32 %v291_v41, %v1464_v45  ;;  %v329_v53 = vmul.f32 %v295_v42, %v1467_v46  ;;  %v299_v54 = vrot.slane %v285_v43, %v1423_v19  ;;  %v303_v55 = vrot.slane %v285_v43, %v1425_v20 }
  0x32   : > { %v307_v57 = vrot.slane %v286_v44, %v1423_v19  ;;  %v311_v58 = vrot.slane %v286_v44, %v1425_v20  ;;  %v287_v59 = vcombine.high %v285_v43, %v285_v43  ;;  %v410_v60 = vmul.f32 %v373_v47, %v1474_v51 }
  0x33   : > { %336 = vst [vmem:[%s1488_s18] sm:$0x1f] %v328_v52  ;;  %337 = vst [vmem:[%s1488_s18 + $0x8] sm:$0x1f] %v329_v53  ;;  %v330_v61 = vmul.f32 %v299_v54, %v1464_v45  ;;  %v331_v62 = vmul.f32 %v303_v55, %v1467_v46  ;;  %v484_v63 = vmul.f32 %v447_v48, %v1464_v45 }
  0x34   : > { %v411_v0 = vmul.f32 %v377_v49, %v1481_v56  ;;  %v332_v1 = vmul.f32 %v307_v57, %v1464_v45  ;;  %v333_v2 = vmul.f32 %v311_v58, %v1467_v46  ;;  %v315_v3 = vrot.slane %v287_v59, %v1423_v19  ;;  %v1541_v57 = vld [vmem:[%s1461_s17 + $0x28] sm:$0x1f] }
  0x35   : > { %v319_v4 = vrot.slane %v287_v59, %v1425_v20  ;;  %338 = vst [vmem:[%s1488_s18 + $0x10] sm:$0x1f] %v330_v61  ;;  %339 = vst [vmem:[%s1488_s18 + $0x18] sm:$0x1f] %v331_v62  ;;  %v492_v5 = vadd.f32 %v484_v63, %v410_v60  ;;  %v485_v6 = vmul.f32 %v451_v50, %v1467_v46 }
  0x36   : > { %v367_v7 = vrot.slane %v353_v36, %v1419_v16  ;;  %v441_v8 = vrot.slane %v427_v38, %v1419_v16  ;;  %340 = vst [vmem:[%s1488_s18 + $0x20] sm:$0x1f] %v332_v1  ;;  %341 = vst [vmem:[%s1488_s18 + $0x28] sm:$0x1f] %v333_v2  ;;  %v334_v9 = vmul.f32 %v315_v3, %v1464_v45  ;;  %v1529_v38 = vld [vmem:[%s1461_s17 + $0x20] sm:$0x1f] }
  0x37   : > { %v335_v10 = vmul.f32 %v319_v4, %v1467_v46  ;;  %v368_v11 = vcombine.high %v360_v35, %v360_v35  ;;  %v442_v12 = vcombine.high %v434_v37, %v434_v37  ;;  %1210 = vst [vmem:[%s1488_s18 + $0x40] sm:$0x1f] %v492_v5  ;;  %v493_v13 = vadd.f32 %v485_v6, %v411_v0 }
  0x38   : > { %v381_v14 = vrot.slane %v367_v7, %v1423_v19  ;;  %v455_v15 = vrot.slane %v441_v8, %v1423_v19  ;;  %v385_v18 = vrot.slane %v367_v7, %v1425_v20  ;;  %342 = vst [vmem:[%s1488_s18 + $0x30] sm:$0x1f] %v334_v9  ;;  %v459_v21 = vrot.slane %v441_v8, %v1425_v20 }
  0x39   : > { %343 = vst [vmem:[%s1488_s18 + $0x38] sm:$0x1f] %v335_v10  ;;  %v389_v22 = vrot.slane %v368_v11, %v1423_v19  ;;  %v463_v23 = vrot.slane %v442_v12, %v1423_v19  ;;  %v393_v24 = vrot.slane %v368_v11, %v1425_v20  ;;  %1211 = vst [vmem:[%s1488_s18 + $0x48] sm:$0x1f] %v493_v13 }
  0x3a   : > { %v412_v25 = vmul.f32 %v381_v14, %v1474_v51  ;;  %v486_v26 = vmul.f32 %v455_v15, %v1464_v45  ;;  %v413_v29 = vmul.f32 %v385_v18, %v1481_v56  ;;  %v467_v33 = vrot.slane %v442_v12, %v1425_v20 }
  0x3b   : > { %v487_v34 = vmul.f32 %v459_v21, %v1467_v46  ;;  %v414_v35 = vmul.f32 %v389_v22, %v1474_v51  ;;  %v488_v36 = vmul.f32 %v463_v23, %v1464_v45  ;;  %v415_v37 = vmul.f32 %v393_v24, %v1481_v56 }
  0x3c   : > { %v494_v41 = vadd.f32 %v486_v26, %v412_v25  ;;  %v489_v42 = vmul.f32 %v467_v33, %v1467_v46  ;;  %v369_v43 = vcombine.high %v367_v7, %v367_v7  ;;  %v443_v44 = vcombine.high %v441_v8, %v441_v8 }
  0x3d   : > { %v495_v47 = vadd.f32 %v487_v34, %v413_v29  ;;  %v496_v48 = vadd.f32 %v488_v36, %v414_v35  ;;  %v538_v49 = vrot.slane %v1450_v39, %v1423_v19  ;;  %v612_v50 = vrot.slane %v1454_v40, %v1423_v19 }
  0x3e   : > { %1212 = vst [vmem:[%s1488_s18 + $0x50] sm:$0x1f] %v494_v41  ;;  %v497_v52 = vadd.f32 %v489_v42, %v415_v37  ;;  %v397_v53 = vrot.slane %v369_v43, %v1423_v19  ;;  %v471_v54 = vrot.slane %v443_v44, %v1423_v19  ;;  %v401_v55 = vrot.slane %v369_v43, %v1425_v20 }
  0x3f   : > { %1213 = vst [vmem:[%s1488_s18 + $0x58] sm:$0x1f] %v495_v47  ;;  %1214 = vst [vmem:[%s1488_s18 + $0x60] sm:$0x1f] %v496_v48  ;;  %v475_v58 = vrot.slane %v443_v44, %v1425_v20  ;;  %v575_v59 = vmul.f32 %v538_v49, %v1529_v38  ;;  %v649_v60 = vmul.f32 %v612_v50, %v1474_v51 }
  0x40   : > { %v673_v61 = vrot.slane %v1430_v27, %v1419_v16  ;;  %1215 = vst [vmem:[%s1488_s18 + $0x68] sm:$0x1f] %v497_v52  ;;  %v416_v62 = vmul.f32 %v397_v53, %v1474_v51  ;;  %v490_v63 = vmul.f32 %v471_v54, %v1464_v45  ;;  %v417_v0 = vmul.f32 %v401_v55, %v1481_v56 }
  0x41   : > { %v542_v1 = vrot.slane %v1450_v39, %v1425_v20  ;;  %v491_v2 = vmul.f32 %v475_v58, %v1467_v46  ;;  %v657_v3 = vadd.f32 %v649_v60, %v575_v59  ;;  %v616_v27 = vrot.slane %v1454_v40, %v1425_v20 }
  0x42   : > { %v681_v4 = vrot.slane %v673_v61, %v1419_v16  ;;  %v498_v5 = vadd.f32 %v490_v63, %v416_v62  ;;  %v518_v7 = vcombine.high %v1437_v30, %v1437_v30  ;;  %v592_v8 = vcombine.high %v1440_v31, %v1440_v31 }
  0x43   : > { %v576_v6 = vmul.f32 %v542_v1, %v1541_v57  ;;  %v499_v9 = vadd.f32 %v491_v2, %v417_v0  ;;  %v650_v11 = vmul.f32 %v616_v27, %v1481_v56  ;;  %v674_v15 = vcombine.high %v673_v61, %v673_v61 }
  0x44   : > { %v694_v10 = vrot.slane %v681_v4, %v1423_v19  ;;  %v698_v12 = vrot.slane %v681_v4, %v1425_v20  ;;  %1216 = vst [vmem:[%s1488_s18 + $0x70] sm:$0x1f] %v498_v5  ;;  %v532_v13 = vrot.slane %v518_v7, %v1419_v16  ;;  %v606_v14 = vrot.slane %v592_v8, %v1419_v16 }
  0x45   : > { %v533_v18 = vcombine.high %v1450_v39, %v1450_v39  ;;  %1217 = vst [vmem:[%s1488_s18 + $0x78] sm:$0x1f] %v499_v9  ;;  %v658_v31 = vadd.f32 %v650_v11, %v576_v6  ;;  %v607_v22 = vcombine.high %v1454_v40, %v1454_v40  ;;  %v688_v25 = vrot.slane %v674_v15, %v1419_v16 }
  0x46   : > { %v731_v30 = vmul.f32 %v694_v10, %v1464_v45  ;;  %v732_v21 = vmul.f32 %v698_v12, %v1467_v46  ;;  %v546_v23 = vrot.slane %v532_v13, %v1423_v19  ;;  %v620_v24 = vrot.slane %v606_v14, %v1423_v19 }
  0x47   : > { %v550_v26 = vrot.slane %v532_v13, %v1425_v20  ;;  %v624_v33 = vrot.slane %v606_v14, %v1425_v20  ;;  %v554_v34 = vrot.slane %v533_v18, %v1423_v19  ;;  %v702_v40 = vrot.slane %v688_v25, %v1423_v19 }
  0x48   : > { %v739_v39 = vadd.f32 %v731_v30, %v657_v3  ;;  %v740_v29 = vadd.f32 %v732_v21, %v658_v31  ;;  %v577_v35 = vmul.f32 %v546_v23, %v1529_v38  ;;  %v651_v36 = vmul.f32 %v620_v24, %v1474_v51 }
  0x49   : > { %v578_v37 = vmul.f32 %v550_v26, %v1541_v57  ;;  %v652_v41 = vmul.f32 %v624_v33, %v1481_v56  ;;  %v706_v42 = vrot.slane %v688_v25, %v1425_v20  ;;  %v579_v43 = vmul.f32 %v554_v34, %v1529_v38 }
  0x4a   : > { %1218 = vst [vmem:[%s1488_s18 + $0x80] sm:$0x1f] %v739_v39  ;;  %1219 = vst [vmem:[%s1488_s18 + $0x88] sm:$0x1f] %v740_v29  ;;  %v628_v44 = vrot.slane %v607_v22, %v1423_v19  ;;  %v659_v47 = vadd.f32 %v651_v36, %v577_v35  ;;  %v733_v48 = vmul.f32 %v702_v40, %v1464_v45 }
  0x4b   : > { %v689_v49 = vcombine.high %v681_v4, %v681_v4  ;;  %v558_v50 = vrot.slane %v533_v18, %v1425_v20  ;;  %v660_v52 = vadd.f32 %v652_v41, %v578_v37  ;;  %v734_v53 = vmul.f32 %v706_v42, %v1467_v46 }
  0x4c   : > { %v653_v54 = vmul.f32 %v628_v44, %v1474_v51  ;;  %v632_v55 = vrot.slane %v607_v22, %v1425_v20  ;;  %v741_v58 = vadd.f32 %v733_v48, %v659_v47  ;;  %v534_v1 = vcombine.high %v532_v13, %v532_v13 }
  0x4d   : > { %v710_v59 = vrot.slane %v689_v49, %v1423_v19  ;;  %v580_v60 = vmul.f32 %v558_v50, %v1541_v57  ;;  %v714_v61 = vrot.slane %v689_v49, %v1425_v20  ;;  %v742_v62 = vadd.f32 %v734_v53, %v660_v52 }
  0x4e   : > { %v661_v63 = vadd.f32 %v653_v54, %v579_v43  ;;  %v654_v0 = vmul.f32 %v632_v55, %v1481_v56  ;;  %1220 = vst [vmem:[%s1488_s18 + $0x90] sm:$0x1f] %v741_v58  ;;  %v608_v4 = vcombine.high %v606_v14, %v606_v14  ;;  %v690_v27 = vcombine.high %v688_v25, %v688_v25 }
  0x4f   : > { %v735_v2 = vmul.f32 %v710_v59, %v1464_v45  ;;  %v736_v3 = vmul.f32 %v714_v61, %v1467_v46  ;;  %1221 = vst [vmem:[%s1488_s18 + $0x98] sm:$0x1f] %v742_v62  ;;  %v562_v6 = vrot.slane %v534_v1, %v1423_v19  ;;  %v566_v7 = vrot.slane %v534_v1, %v1425_v20 }
  0x50   : > { %v662_v5 = vadd.f32 %v654_v0, %v580_v60  ;;  %v764_v8 = vrot.slane %v1432_v28, %v1419_v16  ;;  %v636_v10 = vrot.slane %v608_v4, %v1423_v19  ;;  %v718_v11 = vrot.slane %v690_v27, %v1423_v19 }
  0x51   : > { %v743_v9 = vadd.f32 %v735_v2, %v661_v63  ;;  %v640_v12 = vrot.slane %v608_v4, %v1425_v20  ;;  %v581_v14 = vmul.f32 %v562_v6, %v1529_v38  ;;  %v582_v15 = vmul.f32 %v566_v7, %v1541_v57 }
  0x52   : > { %v744_v13 = vadd.f32 %v736_v3, %v662_v5  ;;  %v722_v18 = vrot.slane %v690_v27, %v1425_v20  ;;  %v655_v30 = vmul.f32 %v636_v10, %v1474_v51  ;;  %v737_v31 = vmul.f32 %v718_v11, %v1464_v45 }
  0x53   : > { %1222 = vst [vmem:[%s1488_s18 + $0xa0] sm:$0x1f] %v743_v9  ;;  %v656_v28 = vmul.f32 %v640_v12, %v1481_v56  ;;  %v772_v21 = vrot.slane %v764_v8, %v1419_v16  ;;  %v838_v23 = vrot.slane %v1443_v32, %v1419_v16  ;;  %v765_v24 = vcombine.high %v764_v8, %v764_v8 }
  0x54   : > { %1223 = vst [vmem:[%s1488_s18 + $0xa8] sm:$0x1f] %v744_v13  ;;  %v738_v22 = vmul.f32 %v722_v18, %v1467_v46  ;;  %v921_v25 = vmul.f32 1.661628, %v1421_v17  ;;  %v663_v26 = vadd.f32 %v655_v30, %v581_v14 }
  0x55   : > { %v664_v39 = vadd.f32 %v656_v28, %v582_v15  ;;  %v785_v29 = vrot.slane %v772_v21, %v1423_v19  ;;  %v789_v45 = vrot.slane %v772_v21, %v1425_v20  ;;  %v846_v33 = vrot.slane %v838_v23, %v1419_v16 }
  0x56   : > { %v779_v34 = vrot.slane %v765_v24, %v1419_v16  ;;  %v839_v35 = vcombine.high %v838_v23, %v838_v23  ;;  %v780_v46 = vcombine.high %v772_v21, %v772_v21  ;;  %v745_v36 = vadd.f32 %v737_v31, %v663_v26 }
  0x57   : > { %v746_v40 = vadd.f32 %v738_v22, %v664_v39  ;;  %v822_v32 = vmul.f32 %v785_v29, %v1529_v38  ;;  %v823_v17 = vmul.f32 %v789_v45, %v1541_v57  ;;  %v859_v37 = vrot.slane %v846_v33, %v1423_v19 }
  0x58   : > { %v863_v41 = vrot.slane %v846_v33, %v1425_v20  ;;  %v793_v42 = vrot.slane %v779_v34, %v1423_v19  ;;  %v853_v43 = vrot.slane %v839_v35, %v1419_v16  ;;  %1224 = vst [vmem:[%s1488_s18 + $0xb0] sm:$0x1f] %v745_v36  ;;  %v797_v44 = vrot.slane %v779_v34, %v1425_v20 }
  0x59   : > { %1225 = vst [vmem:[%s1488_s18 + $0xb8] sm:$0x1f] %v746_v40  ;;  %v801_v47 = vrot.slane %v780_v46, %v1423_v19  ;;  %v854_v48 = vcombine.high %v846_v33, %v846_v33  ;;  %v805_v49 = vrot.slane %v780_v46, %v1425_v20  ;;  %v896_v50 = vmul.f32 %v859_v37, %v1474_v51 }
  0x5a   : > { %v897_v52 = vmul.f32 %v863_v41, %v1481_v56  ;;  %v824_v53 = vmul.f32 %v793_v42, %v1529_v38  ;;  %v867_v54 = vrot.slane %v853_v43, %v1423_v19  ;;  %v825_v55 = vmul.f32 %v797_v44, %v1541_v57  ;;  %v1037_v42 = vld [vmem:[%s1488_s18 + $0x20] sm:$0xff] (%p1390_p6)  ;;  %v1041_v44 = vld [vmem:[%s1488_s18 + $0x30] sm:$0xff] (%p1390_p6) }
  0x5b   : > { %v871_v58 = vrot.slane %v853_v43, %v1425_v20  ;;  %v826_v59 = vmul.f32 %v801_v47, %v1529_v38  ;;  %v875_v60 = vrot.slane %v854_v48, %v1423_v19  ;;  %v904_v61 = vadd.f32 %v896_v50, %v822_v32  ;;  %1038 = vst [vmem:[%s1708_s24 + $0x40] sm:$0xff] (%p1390_p6), %v1037_v42  ;;  %v1043_v47 = vld [vmem:[%s1488_s18 + $0x38] sm:$0xff] (%p1390_p6)  ;;  %v1049_v50 = vld [vmem:[%s1488_s18 + $0x50] sm:$0xff] (%p1390_p6) }
  0x5c   : > { %v905_v62 = vadd.f32 %v897_v52, %v823_v17  ;;  %v898_v63 = vmul.f32 %v867_v54, %v1474_v51  ;;  %v827_v0 = vmul.f32 %v805_v49, %v1541_v57  ;;  %v879_v3 = vrot.slane %v854_v48, %v1425_v20  ;;  %v1045_v48 = vld [vmem:[%s1488_s18 + $0x40] sm:$0xff] (%p1390_p6)  ;;  %1042 = vst [vmem:[%s1708_s24 + $0x60] sm:$0xff] (%p1390_p6), %v1041_v44  ;;  %v1047_v49 = vld [vmem:[%s1488_s18 + $0x48] sm:$0xff] (%p1390_p6)  ;;  %v1051_v52 = vld [vmem:[%s1488_s18 + $0x58] sm:$0xff] (%p1390_p6) }
  0x5d   : > { %v899_v1 = vmul.f32 %v871_v58, %v1481_v56  ;;  %v900_v2 = vmul.f32 %v875_v60, %v1474_v51  ;;  %v781_v4 = vcombine.high %v779_v34, %v779_v34  ;;  %1226 = vst [vmem:[%s1488_s18 + $0xc0] sm:$0x1f] %v904_v61  ;;  %v855_v5 = vcombine.high %v853_v43, %v853_v43  ;;  %v1039_v43 = vld [vmem:[%s1488_s18 + $0x28] sm:$0xff] (%p1390_p6)  ;;  %v1059_v58 = vld [vmem:[%s1488_s18 + $0x78] sm:$0xff] (%p1390_p6)  ;;  %v1065_v61 = vld [vmem:[%s1488_s18 + $0x90] sm:$0xff] (%p1390_p6) }
  0x5e   : > { %1227 = vst [vmem:[%s1488_s18 + $0xc8] sm:$0x1f] %v905_v62  ;;  %v906_v27 = vadd.f32 %v898_v63, %v824_v53  ;;  %v929_v6 = vrot.slane %v921_v25, %v1419_v16  ;;  %v901_v9 = vmul.f32 %v879_v3, %v1481_v56  ;;  %1040 = vst [vmem:[%s1708_s24 + $0x48] sm:$0xff] (%p1390_p6), %v1039_v43  ;;  %v1053_v53 = vld [vmem:[%s1488_s18 + $0x60] sm:$0xff] (%p1390_p6)  ;;  %v1055_v54 = vld [vmem:[%s1488_s18 + $0x68] sm:$0xff] (%p1390_p6) }
  0x5f   : > { %v907_v7 = vadd.f32 %v899_v1, %v825_v55  ;;  %v908_v8 = vadd.f32 %v900_v2, %v826_v59  ;;  %v809_v10 = vrot.slane %v781_v4, %v1423_v19  ;;  %v883_v11 = vrot.slane %v855_v5, %v1423_v19  ;;  %1044 = vst [vmem:[%s1708_s24 + $0x68] sm:$0xff] (%p1390_p6), %v1043_v47  ;;  %v1057_v55 = vld [vmem:[%s1488_s18 + $0x70] sm:$0xff] (%p1390_p6)  ;;  %v1061_v59 = vld [vmem:[%s1488_s18 + $0x80] sm:$0xff] (%p1390_p6)  ;;  %v1063_v60 = vld [vmem:[%s1488_s18 + $0x88] sm:$0xff] (%p1390_p6) }
  0x60   : > { %1228 = vst [vmem:[%s1488_s18 + $0xd0] sm:$0x1f] %v906_v27  ;;  %v813_v12 = vrot.slane %v781_v4, %v1425_v20  ;;  %v887_v13 = vrot.slane %v855_v5, %v1425_v20  ;;  %v937_v14 = vrot.slane %v929_v6, %v1419_v16  ;;  %v909_v15 = vadd.f32 %v901_v9, %v827_v0  ;;  %v1067_v62 = vld [vmem:[%s1488_s18 + $0x98] sm:$0xff] (%p1390_p6)  ;;  %v1069_v63 = vld [vmem:[%s1488_s18 + $0xa0] sm:$0xff] (%p1390_p6)  ;;  %v1071_v0 = vld [vmem:[%s1488_s18 + $0xa8] sm:$0xff] (%p1390_p6) }
  0x61   : > { %1229 = vst [vmem:[%s1488_s18 + $0xd8] sm:$0x1f] %v907_v7  ;;  %1230 = vst [vmem:[%s1488_s18 + $0xe0] sm:$0x1f] %v908_v8  ;;  %v828_v18 = vmul.f32 %v809_v10, %v1529_v38  ;;  %v930_v30 = vcombine.high %v929_v6, %v929_v6  ;;  %v902_v31 = vmul.f32 %v883_v11, %v1474_v51  ;;  %v1073_v1 = vld [vmem:[%s1488_s18 + $0xb0] sm:$0xff] (%p1390_p6)  ;;  %v1075_v2 = vld [vmem:[%s1488_s18 + $0xb8] sm:$0xff] (%p1390_p6) }
  0x62   : > { %v829_v28 = vmul.f32 %v813_v12, %v1541_v57  ;;  %v903_v21 = vmul.f32 %v887_v13, %v1481_v56  ;;  %v950_v22 = vrot.slane %v937_v14, %v1423_v19  ;;  %1231 = vst [vmem:[%s1488_s18 + $0xe8] sm:$0x1f] %v909_v15  ;;  %v954_v23 = vrot.slane %v937_v14, %v1425_v20 }
  0x63   : > { %v944_v24 = vrot.slane %v930_v30, %v1419_v16  ;;  %v945_v25 = vcombine.high %v937_v14, %v937_v14  ;;  %v910_v26 = vadd.f32 %v902_v31, %v828_v18  ;;  %1046 = vst [vmem:[%s1708_s24 + $0x80] sm:$0xff] (%p1390_p6), %v1045_v48  ;;  %1048 = vst [vmem:[%s1708_s24 + $0x88] sm:$0xff] (%p1390_p6), %v1047_v49 }
  0x64   : > { %v911_v39 = vadd.f32 %v903_v21, %v829_v28  ;;  %v987_v29 = vmul.f32 %v950_v22, %v1529_v38  ;;  %v988_v51 = vmul.f32 %v954_v23, %v1541_v57  ;;  %1050 = vst [vmem:[%s1708_s24 + $0xa0] sm:$0xff] (%p1390_p6), %v1049_v50  ;;  %1052 = vst [vmem:[%s1708_s24 + $0xa8] sm:$0xff] (%p1390_p6), %v1051_v52  ;;  %v1077_v3 = vld [vmem:[%s1488_s18 + $0xc0] sm:$0xff] (%p1390_p6) }
  0x65   : > { %v958_v45 = vrot.slane %v944_v24, %v1423_v19  ;;  %v962_v56 = vrot.slane %v944_v24, %v1425_v20  ;;  %v966_v33 = vrot.slane %v945_v25, %v1423_v19  ;;  %1232 = vst [vmem:[%s1488_s18 + $0xf0] sm:$0x1f] %v910_v26  ;;  %v970_v16 = vrot.slane %v945_v25, %v1425_v20  ;;  %v1079_v4 = vld [vmem:[%s1488_s18 + $0xc8] sm:$0xff] (%p1390_p6) }
  0x66   : > { %1233 = vst [vmem:[%s1488_s18 + $0xf8] sm:$0x1f] %v911_v39  ;;  %1234 = vst [vmem:[%s1488_s18 + $0x100] sm:$0x1f] %v987_v29  ;;  %v946_v34 = vcombine.high %v944_v24, %v944_v24  ;;  %1010 = sbr.rel (!%p1390_p6) target bundleno = 123 (0x7b), region = 93 }
  0x67   : > { %1235 = vst [vmem:[%s1488_s18 + $0x108] sm:$0x1f] %v988_v51  ;;  %v989_v35 = vmul.f32 %v958_v45, %v1529_v38  ;;  %v990_v46 = vmul.f32 %v962_v56, %v1541_v57  ;;  %v991_v36 = vmul.f32 %v966_v33, %v1529_v38  ;;  %v992_v40 = vmul.f32 %v970_v16, %v1541_v57  ;;  %v1081_v27 = vld [vmem:[%s1488_s18 + $0xd0] sm:$0xff] (%p1390_p6) }
  0x68   : > { %v974_v32 = vrot.slane %v946_v34, %v1423_v19  ;;  %v978_v17 = vrot.slane %v946_v34, %v1425_v20  ;;  %v1029_v19 = vld [vmem:[%s1488_s18] sm:$0xff] (%p1390_p6)  ;;  %v1031_v20 = vld [vmem:[%s1488_s18 + $0x8] sm:$0xff] (%p1390_p6)  ;;  %1054 = vst [vmem:[%s1708_s24 + $0xc0] sm:$0xff] (%p1390_p6), %v1053_v53  ;;  %1056 = vst [vmem:[%s1708_s24 + $0xc8] sm:$0xff] (%p1390_p6), %v1055_v54 }
  0x69   : > { %1236 = vst [vmem:[%s1488_s18 + $0x110] sm:$0x1f] %v989_v35  ;;  %1237 = vst [vmem:[%s1488_s18 + $0x118] sm:$0x1f] %v990_v46  ;;  %v1083_v5 = vld [vmem:[%s1488_s18 + $0xd8] sm:$0xff] (%p1390_p6)  ;;  %v1085_v6 = vld [vmem:[%s1488_s18 + $0xe0] sm:$0xff] (%p1390_p6) }
  0x6a   : > { %1238 = vst [vmem:[%s1488_s18 + $0x120] sm:$0x1f] %v991_v36  ;;  %1239 = vst [vmem:[%s1488_s18 + $0x128] sm:$0x1f] %v992_v40  ;;  %v993_v37 = vmul.f32 %v974_v32, %v1529_v38  ;;  %v994_v41 = vmul.f32 %v978_v17, %v1541_v57  ;;  %v1033_v38 = vld [vmem:[%s1488_s18 + $0x10] sm:$0xff] (%p1390_p6)  ;;  %v1035_v57 = vld [vmem:[%s1488_s18 + $0x18] sm:$0xff] (%p1390_p6) }
  0x6b   : > { %1030 = vst [vmem:[%s1708_s24] sm:$0xff] (%p1390_p6), %v1029_v19  ;;  %1032 = vst [vmem:[%s1708_s24 + $0x8] sm:$0xff] (%p1390_p6), %v1031_v20  ;;  %v1087_v7 = vld [vmem:[%s1488_s18 + $0xe8] sm:$0xff] (%p1390_p6) }
  0x6c   : > { %1240 = vst [vmem:[%s1488_s18 + $0x130] sm:$0x1f] %v993_v37  ;;  %1241 = vst [vmem:[%s1488_s18 + $0x138] sm:$0x1f] %v994_v41  ;;  %v1089_v8 = vld [vmem:[%s1488_s18 + $0xf0] sm:$0xff] (%p1390_p6) }
  0x6d   : > { %1034 = vst [vmem:[%s1708_s24 + $0x20] sm:$0xff] %v1033_v38  ;;  %1036 = vst [vmem:[%s1708_s24 + $0x28] sm:$0xff] %v1035_v57  ;;  %v1091_v9 = vld [vmem:[%s1488_s18 + $0xf8] sm:$0xff]  ;;  %v1093_v10 = vld [vmem:[%s1488_s18 + $0x100] sm:$0xff] }
  0x6e   : > { %1058 = vst [vmem:[%s1708_s24 + $0xe0] sm:$0xff] %v1057_v55  ;;  %1060 = vst [vmem:[%s1708_s24 + $0xe8] sm:$0xff] %v1059_v58  ;;  %v1095_v11 = vld [vmem:[%s1488_s18 + $0x108] sm:$0xff] }
  0x6f   : > { %1062 = vst [vmem:[%s1708_s24 + $0x100] sm:$0xff] %v1061_v59  ;;  %1064 = vst [vmem:[%s1708_s24 + $0x108] sm:$0xff] %v1063_v60 }
  0x70   : > { %1066 = vst [vmem:[%s1708_s24 + $0x120] sm:$0xff] %v1065_v61  ;;  %1068 = vst [vmem:[%s1708_s24 + $0x128] sm:$0xff] %v1067_v62  ;;  %v1097_v12 = vld [vmem:[%s1488_s18 + $0x110] sm:$0xff]  ;;  %v1099_v13 = vld [vmem:[%s1488_s18 + $0x118] sm:$0xff] }
  0x71   : > { %1070 = vst [vmem:[%s1708_s24 + $0x140] sm:$0xff] %v1069_v63  ;;  %1072 = vst [vmem:[%s1708_s24 + $0x148] sm:$0xff] %v1071_v0  ;;  %v1101_v14 = vld [vmem:[%s1488_s18 + $0x120] sm:$0xff]  ;;  %v1103_v15 = vld [vmem:[%s1488_s18 + $0x128] sm:$0xff] }
  0x72   : > { %1074 = vst [vmem:[%s1708_s24 + $0x160] sm:$0xff] %v1073_v1  ;;  %1076 = vst [vmem:[%s1708_s24 + $0x168] sm:$0xff] %v1075_v2 }
  0x73   : > { %1078 = vst [vmem:[%s1708_s24 + $0x180] sm:$0xff] %v1077_v3  ;;  %1080 = vst [vmem:[%s1708_s24 + $0x188] sm:$0xff] %v1079_v4  ;;  %v1105_v18 = vld [vmem:[%s1488_s18 + $0x130] sm:$0xff]  ;;  %v1107_v30 = vld [vmem:[%s1488_s18 + $0x138] sm:$0xff] }
  0x74   : > { %1082 = vst [vmem:[%s1708_s24 + $0x1a0] sm:$0xff] %v1081_v27  ;;  %1084 = vst [vmem:[%s1708_s24 + $0x1a8] sm:$0xff] %v1083_v5 }
  0x75   : > { %1086 = vst [vmem:[%s1708_s24 + $0x1c0] sm:$0xff] %v1085_v6  ;;  %1088 = vst [vmem:[%s1708_s24 + $0x1c8] sm:$0xff] %v1087_v7 }
  0x76   : > { %1090 = vst [vmem:[%s1708_s24 + $0x1e0] sm:$0xff] %v1089_v8  ;;  %1092 = vst [vmem:[%s1708_s24 + $0x1e8] sm:$0xff] %v1091_v9 }
  0x77   : > { %1094 = vst [vmem:[%s1708_s24 + $0x200] sm:$0xff] %v1093_v10  ;;  %1096 = vst [vmem:[%s1708_s24 + $0x208] sm:$0xff] %v1095_v11 }
  0x78   : > { %1098 = vst [vmem:[%s1708_s24 + $0x220] sm:$0xff] %v1097_v12  ;;  %1100 = vst [vmem:[%s1708_s24 + $0x228] sm:$0xff] %v1099_v13 }
  0x79   : > { %1102 = vst [vmem:[%s1708_s24 + $0x240] sm:$0xff] %v1101_v14  ;;  %1104 = vst [vmem:[%s1708_s24 + $0x248] sm:$0xff] %v1103_v15 }
  0x7a   : > { %1106 = vst [vmem:[%s1708_s24 + $0x260] sm:$0xff] %v1105_v18  ;;  %1108 = vst [vmem:[%s1708_s24 + $0x268] sm:$0xff] %v1107_v30 }
  0x7b PF: > { %s12_s13 = sadd.s32 1, %s1333_s13   ;;  %s1807_s9 = smov %s1321_s10 }
  0x7c   : > { %p9_p11 = scmp.ge.s32.totalorder %s12_s13, 4   ;;  %s1808_s10 = smov %s1395_s20 }
  0x7d   : > { %s1809_s11 = smov %s1329_s12  ;;  %s1810_s12 = smov %s1812_s14 }
  0x7e   :  { %11 = sbr.rel (!%p9_p11) target bundleno = 3 (0x3), region = 159 }

</bundles_post_ra>
